<compile_context>
chip_gen: v6e
topology: v6e:2x2x1
jax: 0.10.0
libtpu: 0.0.40
codegen_flags: <defaults>
</compile_context>

<pallas_src>
import jax
import jax.numpy as jnp
from jax.experimental import pallas as pl
from jax.experimental.pallas import tpu as pltpu

_SUBLANE = 8
_LANE = 128
_SMALL_N_THRESHOLD = 65536  # below this, XLA fusion beats pallas_call fixed costs


def _round_up(x, m):
    return pl.cdiv(x, m) * m


def _linear_kernel(x_ref, w_ref, b_ref, o_ref):
    # w_ref / b_ref are (1,) f32 refs in SMEM (scalar path, zero per-step DMA).
    w = w_ref[0]
    b = b_ref[0]
    # VPU fused multiply-add over a lane-dense tile.
    o_ref[...] = x_ref[...] * w + b


def _default_tile_rows():
    # v7x HBM BW is ~2.3x v6e: grow per-step tile to ~4 MiB (2048x512 f32).
    # Double-buffered in+out at 4 MiB/block = 16 MiB, inside the 32 MiB scoped
    # VMEM default, so no vmem_limit_bytes override is needed.
    try:
        kind = jax.devices()[0].device_kind.lower()
        if "v7" in kind:
            return 2048
    except Exception:
        pass
    return 1024  # ~2 MiB tiles: measured ~85% of HBM roofline on v6e / fine on v5e


def linear_reg_forward(x, weight, bias, *, target_cols=512, target_rows=None,
                       force_pallas=False):
    """x: [N, 1] f32; weight: [1, 1] f32 (out, in); bias: [1] f32 -> [N, 1] f32."""
    n, f = x.shape
    assert f == 1 and weight.shape == (1, 1) and bias.shape == (1,)
    dtype = x.dtype

    w_s = weight.reshape(1).astype(dtype)
    b_s = bias.reshape(1).astype(dtype)

    # ---- small-N fast path: let XLA fuse the scalar mul-add ------------------
    if n < _SMALL_N_THRESHOLD and not force_pallas:
        return x * w_s[0] + b_s[0]

    if target_rows is None:
        target_rows = _default_tile_rows()

    # ---- lane-dense repack: [N, 1] -> [rows, cols], cols % 128 == 0 ----------
    cols = min(target_cols, _round_up(n, _LANE))
    cols = max(_LANE, (cols // _LANE) * _LANE)
    rows = pl.cdiv(n, cols)  # do NOT round rows up to a tile multiple

    tile_rows = min(target_rows, _round_up(rows, _SUBLANE))
    if rows >= 2 * _SUBLANE:
        # Ensure >= 2 grid steps so megacore (v7x: 2 TCs) can shard the axis.
        tile_rows = min(tile_rows, _round_up(pl.cdiv(rows, 2), _SUBLANE))
    if tile_rows >= rows:
        tile_rows = rows  # single full-extent block (legal even if not % 8)

    padded = rows * cols
    flat = x.reshape(-1)
    if padded != n:
        flat = jnp.pad(flat, (0, padded - n))
    x2d = flat.reshape(rows, cols)

    grid = (pl.cdiv(rows, tile_rows),)

    out2d = pl.pallas_call(
        _linear_kernel,
        out_shape=jax.ShapeDtypeStruct((rows, cols), dtype),
        grid_spec=pltpu.PrefetchScalarGridSpec(
            num_scalar_prefetch=0,
            grid=grid,
            in_specs=[
                pl.BlockSpec((tile_rows, cols), lambda i: (i, 0)),       # x tile
                pl.BlockSpec(memory_space=pltpu.MemorySpace.SMEM),       # weight
                pl.BlockSpec(memory_space=pltpu.MemorySpace.SMEM),       # bias
            ],
            out_specs=pl.BlockSpec((tile_rows, cols), lambda i: (i, 0)),
        ),
        compiler_params=pltpu.CompilerParams(
            dimension_semantics=("parallel",),
        ),
        cost_estimate=pl.CostEstimate(
            flops=2 * n, transcendentals=0, bytes_accessed=8 * n
        ),
    )(x2d, w_s, b_s)

    if padded == n:
        return out2d.reshape(n, 1)
    return out2d.reshape(-1)[:n].reshape(n, 1)


if __name__ == "__main__":
    key = jax.random.PRNGKey(0)
    kx, kw, kb, kx2, kx3 = jax.random.split(key, 5)

    # Deterministic parameters matching PyTorch shapes: W (1,1), b (1,).
    weight = jax.random.uniform(kw, (1, 1), jnp.float32, minval=-1.0, maxval=1.0)
    bias = jax.random.uniform(kb, (1,), jnp.float32, minval=-1.0, maxval=1.0)

    # 1) Tiny batch consistent with the module (batch=8, in_features=1):
    #    takes the small-N JAX fallback path.
    x = jax.random.normal(kx, (8, 1), dtype=jnp.float32)
    y = linear_reg_forward(x, weight, bias)
    jax.block_until_ready(y)
    assert y.shape == (8, 1)
    assert jnp.allclose(y, x @ weight.T + bias, atol=1e-6)

    # 2) Small batch forced through the Pallas kernel: exercises the pad +
    #    full-extent-block path.
    x2 = jax.random.normal(kx2, (1000, 1), dtype=jnp.float32)
    y2 = linear_reg_forward(x2, weight, bias, force_pallas=True)
    jax.block_until_ready(y2)
    assert y2.shape == (1000, 1)
    assert jnp.allclose(y2, x2 @ weight.T + bias, atol=1e-6)

    # 3) Aligned batch: Pallas path with no pad / no slice and a >=2-step
    #    "parallel" grid (megacore-shardable).
    x3 = jax.random.normal(kx3, (131072, 1), dtype=jnp.float32)
    y3 = linear_reg_forward(x3, weight, bias)
    jax.block_until_ready(y3)
    assert y3.shape == (131072, 1)
    assert jnp.allclose(y3, x3 @ weight.T + bias, atol=1e-5)

    print("KERNEL_OK")
</pallas_src>

<mosaic_0001>
module attributes {stable_mosaic.version = 11 : i64} {
  func.func @_linear_kernel(%arg0: i32, %arg1: memref<2x512xf32, #tpu.memory_space<vmem>>, %arg2: memref<1xf32, #tpu.memory_space<smem>>, %arg3: memref<1xf32, #tpu.memory_space<smem>>, %arg4: memref<2x512xf32, #tpu.memory_space<vmem>>) attributes {dimension_semantics = [#tpu.dimension_semantics<parallel>], iteration_bounds = array<i64: 1>, scalar_prefetch = 0 : i64, scratch_operands = 0 : i64, tpu.core_type = #tpu.core_type<tc>, window_params = [{transform_indices = @transform_0, window_bounds = array<i64: 2, 512>}, {transform_indices = @transform_1, window_bounds = array<i64: 1>}, {transform_indices = @transform_2, window_bounds = array<i64: 1>}, {transform_indices = @transform_3, window_bounds = array<i64: 2, 512>}]} {
    %c0 = arith.constant 0 : index
    %0 = memref.load %arg2[%c0] : memref<1xf32, #tpu.memory_space<smem>>
    %c0_0 = arith.constant 0 : index
    %1 = memref.load %arg3[%c0_0] : memref<1xf32, #tpu.memory_space<smem>>
    %c0_1 = arith.constant 0 : index
    %c0_2 = arith.constant 0 : index
    %2 = vector.load %arg1[%c0_1, %c0_2] : memref<2x512xf32, #tpu.memory_space<vmem>>, vector<2x512xf32>
    %3 = vector.broadcast %0 : f32 to vector<2x512xf32>
    %4 = arith.mulf %2, %3 : vector<2x512xf32>
    %5 = vector.broadcast %1 : f32 to vector<2x512xf32>
    %6 = arith.addf %4, %5 : vector<2x512xf32>
    %c0_3 = arith.constant 0 : index
    %c0_4 = arith.constant 0 : index
    %7 = vector.load %arg4[%c0_3, %c0_4] : memref<2x512xf32, #tpu.memory_space<vmem>>, vector<2x512xf32>
    tpu.vector_store %arg4[%c0_3, %c0_4], %6 {strides = array<i32>} : memref<2x512xf32, #tpu.memory_space<vmem>>, vector<2x512xf32>,
    return
  }
  func.func @transform_0(%arg0: i32) -> (i32, i32) {
    %c0_i32 = arith.constant 0 : i32
    %c0_i32_0 = arith.constant 0 : i32
    return %arg0, %c0_i32 : i32, i32
  }
  func.func @transform_1(%arg0: i32) -> i32 {
    %c0_i32 = arith.constant 0 : i32
    %c0_i32_0 = arith.constant 0 : i32
    return %c0_i32 : i32
  }
  func.func @transform_2(%arg0: i32) -> i32 {
    %c0_i32 = arith.constant 0 : i32
    %c0_i32_0 = arith.constant 0 : i32
    return %c0_i32 : i32
  }
  func.func @transform_3(%arg0: i32) -> (i32, i32) {
    %c0_i32 = arith.constant 0 : i32
    %c0_i32_0 = arith.constant 0 : i32
    return %arg0, %c0_i32 : i32, i32
  }
}

</mosaic_0001>

<bundles_post_ra>
// kernel: tpu_custom_call.1
= control target key start
LH: loop header
LB: loop body
LE: loop exit
PB: predicated region body
PF: predicated region fallthrough
CT: control target
= control target key end

     0   :  { %10 = vsyncpa [#allocation5], 0  ;;  %s132_s0 = inlined_call_operand.hbm [shape: f32[2,512], index: 0, kind: input, shape index: {}]   ;;  %s133_s1 = inlined_call_operand.<no memory space> [shape: f32[1], index: 1, kind: input, shape index: {}]   ;;  %s134_s2 = inlined_call_operand.<no memory space> [shape: f32[1], index: 2, kind: input, shape index: {}]   ;;  %s135_s3 = inlined_call_operand.hbm [shape: f32[2,512], index: 3, kind: output, shape index: {}]  }
   0x1   :  { %11 = vsyncpa [#allocation6], 0  ;;  %s98_s12 = smov [#allocation4]  }
   0x2   :  { %s18_s13 = sshll.u32 %s98_s12, 4  ;;  %s19_s13 = int_to_ptr.vmem [resolvable:$true] %s18_s13 }
   0x3   :  { %s62_s14 = scalar_lea.vmem %s19_s13, 128  ;;  %p67_p1 = scmp.lt.s32.totalorder %s19_s13, %s19_s13 }
   0x4   :  { %p63_p0 = scmp.ne.s32.totalorder %s19_s13, %s62_s14  ;;  %p68_p2 = scmp.lt.s32.totalorder %s62_s14, %s62_s14 }
   0x6   :  { %p69_p3 = por %p68_p2, %p67_p1 }
   0x8   :  { %p70_p4 = pnand %p69_p3, %p63_p0 }
   0xa   :  { %73 = shalt.err (!%p70_p4)
}
   0xb   :  { %21 = dma.hbm_to_vmem [thread:$0]  %s132_s0, 128, %s19_s13, [#allocation5]  }
   0xc   :  { %94 = dma.done.wait [#allocation5], 128  }
   0xd   :  { %95 = vsyncadd [#allocation5], 4294967168  ;;  %v32_v0 = vstv %s133_s1  ;;  %v31_v1 = vld [vmem:[#allocation4] sm:$0xff]  ;;  %v34_v2 = vstv %s134_s2  ;;  %s99_s21 = smov [#allocation7]  }
   0xe   :  { %s43_s22 = sshll.u32 %s99_s21, 4  ;;  %v33_v3 = vmul.f32 %v32_v0, %v31_v1  ;;  %s44_s22 = int_to_ptr.vmem [resolvable:$true] %s43_s22 }
   0xf   :  { %s74_s23 = scalar_lea.vmem %s44_s22, 128  ;;  %p79_p6 = scmp.lt.s32.totalorder %s44_s22, %s44_s22 }
  0x10   :  { %v35_v4 = vadd.f32 %v34_v2, %v33_v3  ;;  %p75_p5 = scmp.ne.s32.totalorder %s44_s22, %s74_s23  ;;  %p80_p7 = scmp.lt.s32.totalorder %s74_s23, %s74_s23 }
  0x12   :  { %36 = vst [vmem:[#allocation7] sm:$0xff] %v35_v4  ;;  %p81_p8 = por %p80_p7, %p79_p6 }
  0x14   :  { %p82_p9 = pnand %p81_p8, %p75_p5 }
  0x16   :  { %85 = shalt.err (!%p82_p9)
}
  0x17   :  { %46 = dma.vmem_to_hbm [thread:$0]  %s44_s22, 128, %s135_s3, [#allocation6]  }
  0x18   :  { %96 = dma.done.wait [#allocation6], 128  }
  0x19   :  { %97 = vsyncadd [#allocation6], 4294967168 }
  0x1a   :  { %50 = vsyncpa [#allocation5], 1 }
  0x1b   :  { %51 = vsyncpa [#allocation6], 1 }

</bundles_post_ra>
